<compile_context>
chip_gen: v5e
topology: v5e:2x2
jax: 0.10.0
libtpu: 0.0.40
codegen_flags: <defaults>
</compile_context>

<pallas_src>
import functools

import jax
import jax.numpy as jnp
from jax.experimental import pallas as pl
from jax.experimental.pallas import tpu as pltpu

EPS = 1e-5


def _round_up(v, m):
    return (v + m - 1) // m * m


# ---------------------------------------------------------------------------
# shared helper: e_pre tile = edge_attr @ W0 + xw1[src] + xw2[dst]  (f32 accumulation)
# ---------------------------------------------------------------------------
def _edge_preact(ei_ref, ea_ref, xw_ref, w0_ref, *, n_nodes, tile_m, mm_dtype):
    src = ei_ref[:, 0:1]                                   # (tm, 1) i32, sublane-major
    dst = ei_ref[:, 1:2]
    col = jax.lax.broadcasted_iota(jnp.int32, (tile_m, 2 * n_nodes), 1)
    # Fused endpoint gather: one (tm, 2N) one-hot against the small resident xw_cat;
    # columns [0, N) select xw1[src], columns [N, 2N) select xw2[dst].
    onehot = jnp.where((col == src) | (col == dst + n_nodes),
                       jnp.ones((), mm_dtype), jnp.zeros((), mm_dtype))
    # TODO(synk): for large graphs (2N >~ 256) switch this one-hot-matmul gather to a
    # scalar-prefetched per-row DMA gather (PrefetchScalarGridSpec) instead.
    return (jnp.dot(ea_ref[...].astype(mm_dtype), w0_ref[...],
                    preferred_element_type=jnp.float32)
            + jnp.dot(onehot, xw_ref[...], preferred_element_type=jnp.float32))


# ---------------------------------------------------------------------------
# (A) node-side precompute: xw_cat = [x @ W1 ; x @ W2]   -> (2N, E) in mm_dtype
# ---------------------------------------------------------------------------
def _node_precompute_kernel(x_ref, w12_ref, xw_ref, *, n_nodes):
    x = x_ref[...]                                                     # (N, E) f32
    xw_ref[0:n_nodes, :] = jnp.dot(
        x, w12_ref[0], preferred_element_type=jnp.float32).astype(xw_ref.dtype)
    xw_ref[n_nodes:, :] = jnp.dot(
        x, w12_ref[1], preferred_element_type=jnp.float32).astype(xw_ref.dtype)


# ---------------------------------------------------------------------------
# (B) BN statistics: per-(p) partial [sum, sum^2] accumulated over edge tiles
# ---------------------------------------------------------------------------
def _stats_kernel(ei_ref, ea_ref, xw_ref, w0_ref, stats_ref, *,
                  n_nodes, tile_m, m_real, n_half, mm_dtype):
    p = pl.program_id(0)          # TensorCore-split partial index ("parallel")
    i = pl.program_id(1)          # tile within this partial ("arbitrary")

    @pl.when(i == 0)
    def _():
        stats_ref[...] = jnp.zeros_like(stats_ref)

    e = _edge_preact(ei_ref, ea_ref, xw_ref, w0_ref,
                     n_nodes=n_nodes, tile_m=tile_m, mm_dtype=mm_dtype)

    # Mask rows past the real edge count (partial last tile reads unspecified data;
    # jnp.where also guards against NaN garbage in the padding).
    row = (p * n_half + i) * tile_m + jax.lax.broadcasted_iota(
        jnp.int32, (tile_m, 1), 0)
    e = jnp.where(row < m_real, e, 0.0)

    stats_ref[0:1, :] += jnp.sum(e, axis=0, keepdims=True)        # sum
    stats_ref[1:2, :] += jnp.sum(e * e, axis=0, keepdims=True)    # sum of squares


# ---------------------------------------------------------------------------
# (C) recompute e_pre, normalize + affine + ReLU + residual (fully parallel)
# ---------------------------------------------------------------------------
def _norm_kernel(ei_ref, ea_ref, xw_ref, w0_ref, stats_ref, gamma_ref, beta_ref,
                 out_ref, *, n_nodes, tile_m, m_real, mm_dtype):
    e = _edge_preact(ei_ref, ea_ref, xw_ref, w0_ref,
                     n_nodes=n_nodes, tile_m=tile_m, mm_dtype=mm_dtype)

    s = jnp.sum(stats_ref[...], axis=0)              # (8, E): reduce per-core partials
    inv_m = 1.0 / float(m_real)
    mean = s[0:1, :] * inv_m
    var = s[1:2, :] * inv_m - mean * mean             # biased variance (training BN)
    inv_std = jax.lax.rsqrt(var + EPS)                # EUP slot -> effectively free
    e_bn = (e - mean) * inv_std * gamma_ref[...] + beta_ref[...]
    out_ref[...] = ea_ref[...] + jnp.maximum(e_bn, 0.0)


# ---------------------------------------------------------------------------
# Wrapper
# ---------------------------------------------------------------------------
def bond_gcn_layer(edge_index, x, edge_attr, W, b, gamma, beta, *,
                   mm_dtype=jnp.bfloat16, tile_m=1024):
    """Pallas implementation of BondGCNLayer.forward.

    edge_index: (2, M) int, x: (N, E) f32, edge_attr: (M, E) f32,
    W: (3, E, E) f32 stored as (in, out), b: (3, E) (ignored: cancels under BN),
    gamma/beta: (E,) BatchNorm1d affine parameters.
    mm_dtype: dtype of MXU matmul inputs (bf16 halves matmul-operand DMA on all
              generations; accumulation and all BN/ReLU/residual math stay in f32).
    """
    del b  # Linear biases cancel exactly under the BatchNorm batch-mean subtraction.

    f32 = jnp.float32
    M, E = edge_attr.shape
    N = x.shape[0]
    assert tile_m % 8 == 0

    tm = min(tile_m, _round_up(M, 8))
    n_tiles = pl.cdiv(M, tm)
    if n_tiles >= 2 and n_tiles % 2 == 0:
        split, n_half = 2, n_tiles // 2      # per-TensorCore stats partials (v7x)
    else:
        split, n_half = 1, n_tiles           # odd tile count / single tile fallback

    # Tiny operand prep only; the (M, E) edge_attr is consumed at its native shape
    # and dtype (no pads, no separate bf16 copy). edge_index gets one small (M, 2)
    # transpose so src/dst are sublane-major inside the kernels.
    ei_t = edge_index.T.astype(jnp.int32)                 # (M, 2)
    ea = edge_attr.astype(f32)
    x32 = x.astype(f32)
    w0 = W[0].astype(mm_dtype)                             # (E, E)
    w12 = W[1:3].astype(f32)                               # (2, E, E)
    gamma2d = gamma.reshape(1, E).astype(f32)
    beta2d = beta.reshape(1, E).astype(f32)

    mm_size = jnp.dtype(mm_dtype).itemsize
    vmem = pl.BlockSpec(memory_space=pltpu.MemorySpace.VMEM)

    # (A) hoist the two node-side ExE matmuls onto the N-sized side; emit mm_dtype.
    xw_cat = pl.pallas_call(
        functools.partial(_node_precompute_kernel, n_nodes=N),
        out_shape=jax.ShapeDtypeStruct((2 * N, E), mm_dtype),
        in_specs=[vmem, vmem],
        out_specs=vmem,
        cost_estimate=pl.CostEstimate(
            flops=4 * N * E * E, transcendentals=0,
            bytes_accessed=(N * E + 2 * E * E) * 4 + 2 * N * E * mm_size),
    )(x32, w12)

    # (B) BN statistics. Tile axis carries the accumulator ("arbitrary"); the leading
    #     size-`split` axis is "parallel" so v7x's two TensorCores each build a partial.
    stats = pl.pallas_call(
        functools.partial(_stats_kernel, n_nodes=N, tile_m=tm, m_real=M,
                          n_half=n_half, mm_dtype=mm_dtype),
        grid=(split, n_half),
        out_shape=jax.ShapeDtypeStruct((split, 8, E), f32),
        in_specs=[
            pl.BlockSpec((tm, 2), lambda p, i: (p * n_half + i, 0)),   # edge_index
            pl.BlockSpec((tm, E), lambda p, i: (p * n_half + i, 0)),   # edge_attr (f32)
            pl.BlockSpec((2 * N, E), lambda p, i: (0, 0)),             # xw_cat (resident)
            pl.BlockSpec((E, E), lambda p, i: (0, 0)),                 # W0 (resident)
        ],
        out_specs=pl.BlockSpec((None, 8, E), lambda p, i: (p, 0, 0)),  # per-p partial
        compiler_params=pltpu.CompilerParams(
            dimension_semantics=("parallel", "arbitrary")),
        cost_estimate=pl.CostEstimate(
            flops=M * (2 * E * E + 4 * N * E + 4 * E), transcendentals=0,
            bytes_accessed=M * (E * 4 + 8)
            + (2 * N * E + E * E) * mm_size + split * 8 * E * 4),
    )(ei_t, ea, xw_cat, w0)

    # (C) recompute e_pre and apply BN (batch stats) + affine + ReLU + residual.
    out = pl.pallas_call(
        functools.partial(_norm_kernel, n_nodes=N, tile_m=tm, m_real=M,
                          mm_dtype=mm_dtype),
        grid=(n_tiles,),
        out_shape=jax.ShapeDtypeStruct((M, E), f32),
        in_specs=[
            pl.BlockSpec((tm, 2), lambda i: (i, 0)),                   # edge_index
            pl.BlockSpec((tm, E), lambda i: (i, 0)),                   # edge_attr (f32)
            pl.BlockSpec((2 * N, E), lambda i: (0, 0)),                # xw_cat (resident)
            pl.BlockSpec((E, E), lambda i: (0, 0)),                    # W0 (resident)
            pl.BlockSpec((split, 8, E), lambda i: (0, 0, 0)),          # stats (resident)
            pl.BlockSpec((1, E), lambda i: (0, 0)),                    # gamma
            pl.BlockSpec((1, E), lambda i: (0, 0)),                    # beta
        ],
        out_specs=pl.BlockSpec((tm, E), lambda i: (i, 0)),
        compiler_params=pltpu.CompilerParams(dimension_semantics=("parallel",)),
        cost_estimate=pl.CostEstimate(
            flops=M * (2 * E * E + 4 * N * E + 8 * E),
            transcendentals=n_tiles * E,
            bytes_accessed=M * (2 * E * 4 + 8)
            + (2 * N * E + E * E) * mm_size + (split * 8 + 2) * E * 4),
    )(ei_t, ea, xw_cat, w0, stats, gamma2d, beta2d)

    return out


# ---------------------------------------------------------------------------
# Pure-JAX reference (with biases; they cancel under training-mode BN)
# ---------------------------------------------------------------------------
def reference(edge_index, x, edge_attr, W, b, gamma, beta):
    h_src = x[edge_index[0]]
    h_dst = x[edge_index[1]]
    e = (edge_attr @ W[0] + b[0]) + (h_src @ W[1] + b[1]) + (h_dst @ W[2] + b[2])
    mean = e.mean(axis=0, keepdims=True)
    var = ((e - mean) ** 2).mean(axis=0, keepdims=True)
    e = (e - mean) / jnp.sqrt(var + EPS) * gamma.reshape(1, -1) + beta.reshape(1, -1)
    return edge_attr + jnp.maximum(e, 0.0)


if __name__ == "__main__":
    def run_case(num_nodes, num_edges, embd, mm_dtype, tile_m, atol, rtol):
        key = jax.random.PRNGKey(0)
        ks = jax.random.split(key, 7)
        x = jax.random.normal(ks[0], (num_nodes, embd), dtype=jnp.float32)
        edge_attr = jax.random.normal(ks[1], (num_edges, embd), dtype=jnp.float32)
        edge_index = jax.random.randint(ks[2], (2, num_edges), 0, num_nodes,
                                        dtype=jnp.int32)
        W = (jax.random.normal(ks[3], (3, embd, embd), dtype=jnp.float32)
             / jnp.sqrt(jnp.float32(embd)))
        b = jax.random.normal(ks[4], (3, embd), dtype=jnp.float32) * 0.01
        gamma = 1.0 + 0.1 * jax.random.normal(ks[5], (embd,), dtype=jnp.float32)
        beta = 0.05 * jax.random.normal(ks[6], (embd,), dtype=jnp.float32)

        out = bond_gcn_layer(edge_index, x, edge_attr, W, b, gamma, beta,
                             mm_dtype=mm_dtype, tile_m=tile_m)
        out = jax.block_until_ready(out)
        ref = reference(edge_index, x, edge_attr, W, b, gamma, beta)
        assert out.shape == (num_edges, embd)
        if not jnp.allclose(out, ref, atol=atol, rtol=rtol):
            err = float(jnp.max(jnp.abs(out - ref)))
            raise AssertionError(
                f"mismatch (nodes={num_nodes}, edges={num_edges}, "
                f"mm={jnp.dtype(mm_dtype).name}): max abs err = {err}")

    # 1) small single-tile case, exact f32 matmuls (split=1 path)
    run_case(num_nodes=8, num_edges=16, embd=16,
             mm_dtype=jnp.float32, tile_m=1024, atol=1e-4, rtol=1e-4)
    # 2) multi-tile case: 4 tiles -> 2-way per-core stats partials + last-tile masking
    run_case(num_nodes=24, num_edges=200, embd=16,
             mm_dtype=jnp.float32, tile_m=64, atol=1e-4, rtol=1e-4)
    # 3) bf16 MXU-input path (v6e/v7x-style), f32 accumulation + f32 BN/ReLU/residual
    run_case(num_nodes=8, num_edges=16, embd=16,
             mm_dtype=jnp.bfloat16, tile_m=1024, atol=5e-2, rtol=5e-2)

    print("KERNEL_OK")
</pallas_src>

<mosaic_0001>
module attributes {stable_mosaic.version = 11 : i64} {
  func.func @_node_precompute_kernel(%arg0: memref<8x16xf32, #tpu.memory_space<vmem>>, %arg1: memref<2x16x16xf32, #tpu.memory_space<vmem>>, %arg2: memref<16x16xf32, #tpu.memory_space<vmem>>) attributes {dimension_semantics = [], scalar_prefetch = 0 : i64, scratch_operands = 0 : i64, tpu.core_type = #tpu.core_type<tc>} {
    %c0 = arith.constant 0 : index
    %c0_0 = arith.constant 0 : index
    %0 = vector.load %arg0[%c0, %c0_0] : memref<8x16xf32, #tpu.memory_space<vmem>>, vector<8x16xf32>
    %c0_1 = arith.constant 0 : index
    %c0_2 = arith.constant 0 : index
    %c0_3 = arith.constant 0 : index
    %1 = vector.load %arg1[%c0_1, %c0_2, %c0_3] : memref<2x16x16xf32, #tpu.memory_space<vmem>>, vector<1x16x16xf32>
    %2 = vector.shape_cast %1 : vector<1x16x16xf32> to vector<16x16xf32>
    %cst = arith.constant dense<0.000000e+00> : vector<8x16xf32>
    %3 = tpu.matmul %0, %2, %cst {dimension_numbers = #tpu.dot_dimension_numbers<[1], [0], [0], [1], [0, 0, 1, 1], [], []>} : vector<8x16xf32>, vector<16x16xf32>, vector<8x16xf32> -> vector<8x16xf32>
    %c0_4 = arith.constant 0 : index
    %c0_5 = arith.constant 0 : index
    %4 = vector.load %arg2[%c0_4, %c0_5] : memref<16x16xf32, #tpu.memory_space<vmem>>, vector<8x16xf32>
    tpu.vector_store %arg2[%c0_4, %c0_5], %3 {strides = array<i32>} : memref<16x16xf32, #tpu.memory_space<vmem>>, vector<8x16xf32>,
    %c1 = arith.constant 1 : index
    %c0_6 = arith.constant 0 : index
    %c0_7 = arith.constant 0 : index
    %5 = vector.load %arg1[%c1, %c0_6, %c0_7] : memref<2x16x16xf32, #tpu.memory_space<vmem>>, vector<1x16x16xf32>
    %6 = vector.shape_cast %5 : vector<1x16x16xf32> to vector<16x16xf32>
    %cst_8 = arith.constant dense<0.000000e+00> : vector<8x16xf32>
    %7 = tpu.matmul %0, %6, %cst_8 {dimension_numbers = #tpu.dot_dimension_numbers<[1], [0], [0], [1], [0, 0, 1, 1], [], []>} : vector<8x16xf32>, vector<16x16xf32>, vector<8x16xf32> -> vector<8x16xf32>
    %c8 = arith.constant 8 : index
    %c0_9 = arith.constant 0 : index
    %8 = vector.load %arg2[%c8, %c0_9] : memref<16x16xf32, #tpu.memory_space<vmem>>, vector<8x16xf32>
    tpu.vector_store %arg2[%c8, %c0_9], %7 {strides = array<i32>} : memref<16x16xf32, #tpu.memory_space<vmem>>, vector<8x16xf32>,
    return
  }
}

</mosaic_0001>

<bundles_post_ra>
// kernel: tpu_custom_call.1
= control target key start
LH: loop header
LB: loop body
LE: loop exit
PB: predicated region body
PF: predicated region fallthrough
CT: control target
= control target key end

     0   :  { %7 = vsyncpa [#allocation3], 0  ;;  %s234_s0 = inlined_call_operand.hbm [shape: f32[8,16], index: 0, kind: input, shape index: {}]   ;;  %s235_s1 = inlined_call_operand.hbm [shape: f32[2,16,16], index: 1, kind: input, shape index: {}]   ;;  %s236_s2 = inlined_call_operand.hbm [shape: f32[16,16], index: 2, kind: output, shape index: {}]  }
   0x1   :  { %8 = vsyncpa [#allocation6], 0 }
   0x2   :  { %9 = vsyncpa [#allocation4], 0  ;;  %s15_s11 = sshll.u32 %s234_s0, 4  ;;  %s199_s12 = smov [#allocation2]   ;;  %s16_s11 = int_to_ptr.hbm [resolvable:$true] %s15_s11 }
   0x3   :  { %s17_s13 = sshll.u32 %s199_s12, 4  ;;  %s25_s16 = sshll.u32 %s235_s1, 4  ;;  %s18_s13 = int_to_ptr.vmem [resolvable:$true] %s17_s13  ;;  %s26_s16 = int_to_ptr.hbm [resolvable:$true] %s25_s16 }
   0x4   :  { %20 = dma.hbm_to_vmem [thread:$0]  %s16_s11, 128, %s18_s13, [#allocation3]  }
   0x5   :  { %s200_s17 = smov [#allocation5]   ;;  %s201_s19 = smov 128  }
   0x6   :  { %s27_s18 = sshll.u32 %s200_s17, 4  ;;  %s202_s20 = smov 8   ;;  %s28_s18 = int_to_ptr.vmem [resolvable:$true] %s27_s18 }
   0x7   :  { %33 = dma.hbm_to_vmem [thread:$0]  %s26_s16, 512, %s28_s18, [#allocation6], %s201_s19, %s201_s19, %s202_s20  }
   0x8   :  { %193 = dma.done.wait [#allocation3], 128  }
   0x9   :  { %194 = vsyncadd [#allocation3], 4294967168 }
   0xa   :  { %195 = dma.done.wait [#allocation6], 512  }
   0xb   :  { %196 = vsyncadd [#allocation6], 4294966784  ;;  %v44_v0 = vld [vmem:[#allocation5 + $0x8] sm:$0xff]  ;;  %v72_v1 = vld [vmem:[#allocation5 + $0x18] sm:$0xff]  ;;  %vm45_vm0 = vcmask 130048   ;;  %s203_s0 = smov [#allocation7]  }
   0xc   :  { %v43_v2 = vld [vmem:[#allocation5] sm:$0xff]  ;;  %63 = vmatpush.msra.mxu0 %v44_v0  ;;  %87 = vmatpush.msra.mxu1 %v72_v1  ;;  %v71_v3 = vld [vmem:[#allocation5 + $0x10] sm:$0xff]  ;;  %v42_v4 = vld [vmem:[#allocation2] sm:$0xff]  ;;  %s98_s1 = sshll.u32 %s203_s0, 4  ;;  %s100_s23 = sshll.u32 %s236_s2, 4  ;;  %s99_s1 = int_to_ptr.vmem [resolvable:$true] %s98_s1  ;;  %s101_s23 = int_to_ptr.hbm [resolvable:$true] %s100_s23 }
   0xe   :  { %64 = vmatpush.msra.mxu0 %v43_v2  ;;  %88 = vmatpush.msra.mxu1 %v71_v3 }
   0xf   :  { %114 = vmatmul.msk.f32.vlgmr.msra.gmra.mxu0 %vm45_vm0, %v42_v4  ;;  %115 = vmatmul.msk.f32.vlgmr.msra.gmra.mxu1 %vm45_vm0, %v42_v4 }
  0x8c   :  { %v66_v5 = vpop.f32.mrf.mxu0  ;;  %v90_v6 = vpop.f32.mrf.mxu1 }
  0x8d   :  { %69 = vst.msk [vmem:[#allocation7] sm:$0xff] %vm45_vm0, %v66_v5 }
  0x8e   :  { %93 = vst.msk [vmem:[#allocation7 + $0x8] sm:$0xff] %vm45_vm0, %v90_v6 }
  0x8f   :  { %106 = dma.vmem_to_hbm [thread:$0]  %s99_s1, 256, %s101_s23, [#allocation4], %s201_s19, %s201_s19, %s202_s20  }
  0x90   :  { %197 = dma.done.wait [#allocation4], 256  }
  0x91   :  { %198 = vsyncadd [#allocation4], 4294967040 }
  0x92   :  { %111 = vsyncpa [#allocation3], 1 }
  0x93   :  { %112 = vsyncpa [#allocation6], 1 }
  0x94   :  { %113 = vsyncpa [#allocation4], 1 }

</bundles_post_ra>
